<compile_context>
chip_gen: v7x
topology: tpu7x:2x2x1
jax: 0.10.0
libtpu: 0.0.40
codegen_flags: <defaults>
</compile_context>

<pallas_src>
import jax
import jax.numpy as jnp
from jax import lax
from jax.experimental import pallas as pl
from jax.experimental.pallas import tpu as pltpu


# ------------------------------- kernel -------------------------------------

def pricing_kernel(x1_ref, w1_ref, b1_ref, x2_ref, w2_ref, b2_ref, out_ref):
    """Per N-tile fused forward.

    x1_ref : (TILE_N, P)  f32 streamed tile (only large operand)
    w1_ref : (P, K)       f32 resident (BN folded)
    b1_ref : (1, K)       f32 resident (BN folded)
    x2_ref : (1, S)       f32 resident cross-section of returns
    w2_ref : (S, K)       f32 resident (BN folded)
    b2_ref : (1, K)       f32 resident (BN folded)
    out_ref: (1, TILE_N)  f32 lane-dense output tile
    """
    # factors (model2): N-invariant but tiny; recomputing per tile is free and
    # avoids a separate launch + HBM round-trip.
    f = jnp.maximum(
        jnp.dot(x2_ref[...], w2_ref[...], preferred_element_type=jnp.float32)
        + b2_ref[...], 0.0)                                        # (1, K) f32

    # betas (model1) for this tile: cast to bf16 in-kernel (hidden under DMA).
    x1 = x1_ref[...].astype(jnp.bfloat16)
    w1 = w1_ref[...].astype(jnp.bfloat16)
    h = jnp.dot(x1, w1, preferred_element_type=jnp.float32)        # (TILE_N, K)
    betas = jnp.maximum(h + b1_ref[...], 0.0)                      # f32

    # Contract K of factors(1,K) with K of betas(TILE_N,K) -> (1, TILE_N):
    # lane-dense store, equivalent to (betas @ factors.T).T
    out_ref[...] = lax.dot_general(
        f, betas,
        dimension_numbers=(((1,), (1,)), ((), ())),
        preferred_element_type=jnp.float32)
    # TODO(synk): Dropout omitted (identity under eval-mode semantics).


# ------------------------------- wrapper ------------------------------------

def _round_up(x, m):
    return (x + m - 1) // m * m


def _pick_tile_n(N, tile_n):
    if tile_n is None:
        # >=4 tiles when N is large (keeps both v7x TensorCores busy), multiple
        # of 128 (unmasked lane-dense output stores), capped at 8192 rows so the
        # double-buffered x1 block stays well inside v5e's 16 MiB scoped VMEM.
        tile_n = _round_up(pl.cdiv(N, 4), 128)
        tile_n = max(512, min(8192, tile_n))
    if tile_n >= N:
        return N          # single block; block shape == full array dims
    return tile_n


def ae_pricing_forward(x1, x2, params, *, tile_n=None):
    """x1: (N, port_nums) characteristics, x2: (1, stock_nums) returns -> (N, 1)."""
    N, P = x1.shape
    S = x2.shape[1]
    K = params["w1f"].shape[1]

    tile_n = _pick_tile_n(N, tile_n)
    grid = (pl.cdiv(N, tile_n),)

    out_row = pl.pallas_call(
        pricing_kernel,
        out_shape=jax.ShapeDtypeStruct((1, N), jnp.float32),
        grid=grid,
        in_specs=[
            # Only large streamed operand; default double-buffering; Pallas
            # masks the ragged last block.
            pl.BlockSpec((tile_n, P), lambda i: (i, 0)),
            pl.BlockSpec((P, K), lambda i: (0, 0)),     # resident folded w1
            pl.BlockSpec((1, K), lambda i: (0, 0)),     # resident folded b1
            pl.BlockSpec((1, S), lambda i: (0, 0)),     # resident x2
            pl.BlockSpec((S, K), lambda i: (0, 0)),     # resident folded w2
            pl.BlockSpec((1, K), lambda i: (0, 0)),     # resident folded b2
        ],
        out_specs=pl.BlockSpec((1, tile_n), lambda i: (0, i)),  # lane-dense tile
        compiler_params=pltpu.CompilerParams(
            # "parallel": v7x's 2 TensorCores split the N tiles; neutral on v5e/v6e.
            dimension_semantics=("parallel",)),
    )(x1, params["w1f"], params["b1f"], x2, params["w2f"], params["b2f"])

    # (1, N) row-major -> (N, 1) is a free reshape.
    return out_row.reshape(N, 1)


# ------------------------------ parameters ----------------------------------

def make_params(key, port_nums, stock_nums, factor_nums, k):
    """PyTorch-shaped Linear params with eval-mode BatchNorm folded in (once).

    TODO(synk): a trained module has nontrivial running stats / affine params;
    the fold below uses eval-mode defaults (mean=0, var=1, gamma=1, beta=0).
    """
    eps = 1e-5
    k1, k2, k3, k4 = jax.random.split(key, 4)
    # nn.Linear(port_nums, k): weight (k, port_nums), bias (k,).  Stored as W^T.
    w1 = jax.random.uniform(k1, (k, port_nums), jnp.float32, -0.1, 0.1).T
    b1 = jax.random.uniform(k2, (1, k), jnp.float32, -0.1, 0.1)
    w2 = jax.random.uniform(k3, (factor_nums, stock_nums), jnp.float32, -0.1, 0.1).T
    b2 = jax.random.uniform(k4, (1, factor_nums), jnp.float32, -0.1, 0.1)

    def bn_fold(dim):
        gamma = jnp.ones((1, dim), jnp.float32)
        beta = jnp.zeros((1, dim), jnp.float32)
        rmean = jnp.zeros((1, dim), jnp.float32)
        rvar = jnp.ones((1, dim), jnp.float32)
        scale = gamma / jnp.sqrt(rvar + eps)
        shift = beta - rmean * scale
        return scale, shift

    sc1, sh1 = bn_fold(k)
    sc2, sh2 = bn_fold(factor_nums)
    # y = (x @ W^T + b)*scale + shift  ==  x @ (W^T*scale) + (b*scale + shift)
    return dict(w1f=w1 * sc1, b1f=b1 * sc1 + sh1,
                w2f=w2 * sc2, b2f=b2 * sc2 + sh2)


def reference_forward(x1, x2, params):
    """Pure-JAX reference with the same bf16-matmul / f32-accumulate contract."""
    betas = jnp.maximum(
        jnp.dot(x1.astype(jnp.bfloat16), params["w1f"].astype(jnp.bfloat16),
                preferred_element_type=jnp.float32) + params["b1f"], 0.0)
    factors = jnp.maximum(x2 @ params["w2f"] + params["b2f"], 0.0)
    return betas @ factors.T


# --------------------------------- test --------------------------------------

if __name__ == "__main__":
    port_nums, stock_nums, factor_nums, k = 32, 32, 8, 8

    key = jax.random.PRNGKey(0)
    kp, kx1, kx2, kx3 = jax.random.split(key, 4)
    params = make_params(kp, port_nums, stock_nums, factor_nums, k)
    x2 = jax.random.normal(kx2, (1, stock_nums), jnp.float32)   # cross-section of returns

    # Small case: single full block (block shape == array dims).
    N_small = 8
    x1_small = jax.random.normal(kx1, (N_small, port_nums), jnp.float32)
    out_small = jax.block_until_ready(ae_pricing_forward(x1_small, x2, params))
    ref_small = reference_forward(x1_small, x2, params)
    assert out_small.shape == (N_small, 1)
    assert jnp.allclose(out_small, ref_small, atol=2e-3, rtol=2e-3)

    # Multi-tile ragged case: auto tile_n=1024 -> 4 tiles, last block partial,
    # exercising the pipelined "parallel" grid and partial-block output masking.
    N_big = 4000
    x1_big = jax.random.normal(kx3, (N_big, port_nums), jnp.float32)
    out_big = jax.block_until_ready(ae_pricing_forward(x1_big, x2, params))
    ref_big = reference_forward(x1_big, x2, params)
    assert out_big.shape == (N_big, 1)
    assert jnp.allclose(out_big, ref_big, atol=2e-3, rtol=2e-3)

    # Explicit-tile path as well (512-row tiles, ragged).
    out_512 = jax.block_until_ready(
        ae_pricing_forward(x1_big, x2, params, tile_n=512))
    assert jnp.allclose(out_512, ref_big, atol=2e-3, rtol=2e-3)

    print("KERNEL_OK")
</pallas_src>

<mosaic_0001>
module attributes {stable_mosaic.version = 11 : i64} {
  func.func @pricing_kernel(%arg0: i32, %arg1: memref<8x32xf32, #tpu.memory_space<vmem>>, %arg2: memref<32x8xf32, #tpu.memory_space<vmem>>, %arg3: memref<1x8xf32, #tpu.memory_space<vmem>>, %arg4: memref<1x32xf32, #tpu.memory_space<vmem>>, %arg5: memref<32x8xf32, #tpu.memory_space<vmem>>, %arg6: memref<1x8xf32, #tpu.memory_space<vmem>>, %arg7: memref<1x8xf32, #tpu.memory_space<vmem>>) attributes {dimension_semantics = [#tpu.dimension_semantics<parallel>], iteration_bounds = array<i64: 1>, scalar_prefetch = 0 : i64, scratch_operands = 0 : i64, tpu.core_type = #tpu.core_type<tc>, window_params = [{transform_indices = @transform_0, window_bounds = array<i64: 8, 32>}, {pipeline_mode = #tpu.pipeline_mode<synchronous>, transform_indices = @transform_1, window_bounds = array<i64: 32, 8>}, {pipeline_mode = #tpu.pipeline_mode<synchronous>, transform_indices = @transform_2, window_bounds = array<i64: 1, 8>}, {pipeline_mode = #tpu.pipeline_mode<synchronous>, transform_indices = @transform_3, window_bounds = array<i64: 1, 32>}, {pipeline_mode = #tpu.pipeline_mode<synchronous>, transform_indices = @transform_4, window_bounds = array<i64: 32, 8>}, {pipeline_mode = #tpu.pipeline_mode<synchronous>, transform_indices = @transform_5, window_bounds = array<i64: 1, 8>}, {transform_indices = @transform_6, window_bounds = array<i64: 1, 8>}]} {
    %c0 = arith.constant 0 : index
    %c0_0 = arith.constant 0 : index
    %0 = vector.load %arg4[%c0, %c0_0] : memref<1x32xf32, #tpu.memory_space<vmem>>, vector<1x32xf32>
    %c0_1 = arith.constant 0 : index
    %c0_2 = arith.constant 0 : index
    %1 = vector.load %arg5[%c0_1, %c0_2] : memref<32x8xf32, #tpu.memory_space<vmem>>, vector<32x8xf32>
    %cst = arith.constant dense<0.000000e+00> : vector<1x8xf32>
    %2 = tpu.matmul %0, %1, %cst {dimension_numbers = #tpu.dot_dimension_numbers<[1], [0], [0], [1], [0, 0, 1, 1], [], []>} : vector<1x32xf32>, vector<32x8xf32>, vector<1x8xf32> -> vector<1x8xf32>
    %c0_3 = arith.constant 0 : index
    %c0_4 = arith.constant 0 : index
    %3 = vector.load %arg6[%c0_3, %c0_4] : memref<1x8xf32, #tpu.memory_space<vmem>>, vector<1x8xf32>
    %4 = arith.addf %2, %3 : vector<1x8xf32>
    %cst_5 = arith.constant 0.000000e+00 : f32
    %5 = vector.broadcast %cst_5 : f32 to vector<1x8xf32>
    %6 = arith.maximumf %4, %5 : vector<1x8xf32>
    %c0_6 = arith.constant 0 : index
    %c0_7 = arith.constant 0 : index
    %7 = vector.load %arg1[%c0_6, %c0_7] : memref<8x32xf32, #tpu.memory_space<vmem>>, vector<8x32xf32>
    %8 = arith.truncf %7 : vector<8x32xf32> to vector<8x32xbf16>
    %c0_8 = arith.constant 0 : index
    %c0_9 = arith.constant 0 : index
    %9 = vector.load %arg2[%c0_8, %c0_9] : memref<32x8xf32, #tpu.memory_space<vmem>>, vector<32x8xf32>
    %10 = arith.truncf %9 : vector<32x8xf32> to vector<32x8xbf16>
    %cst_10 = arith.constant dense<0.000000e+00> : vector<8x8xf32>
    %11 = tpu.matmul %8, %10, %cst_10 {dimension_numbers = #tpu.dot_dimension_numbers<[1], [0], [0], [1], [0, 0, 1, 1], [], []>} : vector<8x32xbf16>, vector<32x8xbf16>, vector<8x8xf32> -> vector<8x8xf32>
    %c0_11 = arith.constant 0 : index
    %c0_12 = arith.constant 0 : index
    %12 = vector.load %arg3[%c0_11, %c0_12] : memref<1x8xf32, #tpu.memory_space<vmem>>, vector<1x8xf32>
    %13 = vector.broadcast %12 : vector<1x8xf32> to vector<8x8xf32>
    %14 = arith.addf %11, %13 : vector<8x8xf32>
    %cst_13 = arith.constant 0.000000e+00 : f32
    %15 = vector.broadcast %cst_13 : f32 to vector<8x8xf32>
    %16 = arith.maximumf %14, %15 : vector<8x8xf32>
    %cst_14 = arith.constant dense<0.000000e+00> : vector<1x8xf32>
    %17 = tpu.matmul %6, %16, %cst_14 {dimension_numbers = #tpu.dot_dimension_numbers<[1], [1], [0], [0], [0, 0, 1, 0], [], []>} : vector<1x8xf32>, vector<8x8xf32>, vector<1x8xf32> -> vector<1x8xf32>
    %c0_15 = arith.constant 0 : index
    %c0_16 = arith.constant 0 : index
    %18 = vector.load %arg7[%c0_15, %c0_16] : memref<1x8xf32, #tpu.memory_space<vmem>>, vector<1x8xf32>
    tpu.vector_store %arg7[%c0_15, %c0_16], %17 {strides = array<i32>} : memref<1x8xf32, #tpu.memory_space<vmem>>, vector<1x8xf32>,
    return
  }
  func.func @transform_0(%arg0: i32) -> (i32, i32) {
    %c0_i32 = arith.constant 0 : i32
    %c0_i32_0 = arith.constant 0 : i32
    return %arg0, %c0_i32 : i32, i32
  }
  func.func @transform_1(%arg0: i32) -> (i32, i32) {
    %c0_i32 = arith.constant 0 : i32
    %c0_i32_0 = arith.constant 0 : i32
    %c0_i32_1 = arith.constant 0 : i32
    return %c0_i32, %c0_i32_0 : i32, i32
  }
  func.func @transform_2(%arg0: i32) -> (i32, i32) {
    %c0_i32 = arith.constant 0 : i32
    %c0_i32_0 = arith.constant 0 : i32
    %c0_i32_1 = arith.constant 0 : i32
    return %c0_i32, %c0_i32_0 : i32, i32
  }
  func.func @transform_3(%arg0: i32) -> (i32, i32) {
    %c0_i32 = arith.constant 0 : i32
    %c0_i32_0 = arith.constant 0 : i32
    %c0_i32_1 = arith.constant 0 : i32
    return %c0_i32, %c0_i32_0 : i32, i32
  }
  func.func @transform_4(%arg0: i32) -> (i32, i32) {
    %c0_i32 = arith.constant 0 : i32
    %c0_i32_0 = arith.constant 0 : i32
    %c0_i32_1 = arith.constant 0 : i32
    return %c0_i32, %c0_i32_0 : i32, i32
  }
  func.func @transform_5(%arg0: i32) -> (i32, i32) {
    %c0_i32 = arith.constant 0 : i32
    %c0_i32_0 = arith.constant 0 : i32
    %c0_i32_1 = arith.constant 0 : i32
    return %c0_i32, %c0_i32_0 : i32, i32
  }
  func.func @transform_6(%arg0: i32) -> (i32, i32) {
    %c0_i32 = arith.constant 0 : i32
    %c0_i32_0 = arith.constant 0 : i32
    return %c0_i32, %arg0 : i32, i32
  }
}

</mosaic_0001>

<bundles_post_ra>
// kernel: tpu_custom_call.1
= control target key start
LH: loop header
LB: loop body
LE: loop exit
PB: predicated region body
PF: predicated region fallthrough
CT: control target
= control target key end

     0   :  { %v331_v3 = vmov 0.0   ;;  %v332_v5 = vmov 0.0|0.0   ;;  %vm333_vm0 = vmmov 0   ;;  %s421_s0 = inlined_call_operand.vmem [shape: f32[8,32], index: 0, kind: input, shape index: {}]   ;;  %s422_s1 = inlined_call_operand.vmem [shape: f32[32,8], index: 1, kind: input, shape index: {}]   ;;  %s423_s2 = inlined_call_operand.vmem [shape: f32[1,8], index: 2, kind: input, shape index: {}]   ;;  %s424_s3 = inlined_call_operand.vmem [shape: f32[1,32], index: 3, kind: input, shape index: {}]   ;;  %s425_s4 = inlined_call_operand.vmem [shape: f32[32,8], index: 4, kind: input, shape index: {}]   ;;  %s426_s5 = inlined_call_operand.vmem [shape: f32[1,8], index: 5, kind: input, shape index: {}]   ;;  %s427_s6 = inlined_call_operand.hbm [shape: f32[1,8], index: 6, kind: output, shape index: {}]  }
   0x1   :  { %v108_v0 = vld [vmem:[%s422_s1] sm:$0xff]  ;;  %v109_v1 = vld [vmem:[%s422_s1 + $0x8] sm:$0xff]  ;;  %284 = vmatprep.subr.bf16.mxu1 %v331_v3  ;;  %297 = vmatprep.subr.bf16.mxu0 %v332_v5  ;;  %v110_v7 = vld [vmem:[%s422_s1 + $0x10] sm:$0xff] }
   0x2   :  { %v26_v2 = vld [vmem:[%s425_s4] sm:$0xff]  ;;  %v112_v4 = vpack.c.bf16 %v109_v1, %v108_v0  ;;  %v27_v6 = vld [vmem:[%s425_s4 + $0x8] sm:$0xff]  ;;  %v111_v8 = vld [vmem:[%s422_s1 + $0x18] sm:$0xff]  ;;  %288 = vmatprep.mubr.msk.bf16.mxu1 %vm333_vm0, %v331_v3  ;;  %281 = vmatprep.mubr.msk.f32.mxu0 %vm333_vm0, %v331_v3 }
   0x3   :  { %v298_v9 = vpack.c.bf16 %v27_v6, %v26_v2  ;;  %v28_v10 = vld [vmem:[%s425_s4 + $0x10] sm:$0xff]  ;;  %v29_v11 = vld [vmem:[%s425_s4 + $0x18] sm:$0xff]  ;;  %v113_v12 = vpack.c.bf16 %v111_v8, %v110_v7  ;;  %v106_v13 = vld [vmem:[%s421_s0] sm:$0xff] }
   0x4   :  { %285 = vmatpush3.bf16.msra.mxu1 %v112_v4 }
   0x5   :  { %11 = vsyncpa [#allocation3], 0  ;;  %299 = vmatpush3.bf16.msra.mxu0 %v298_v9  ;;  %286 = vmatprep.subr.bf16.mxu1 %v331_v3  ;;  %v301_v14 = vpack.c.bf16 %v29_v11, %v28_v10  ;;  %v107_v15 = vpack.c.bf16 %v106_v13, %v106_v13  ;;  %vm31_vm1 = vcmask 261120   ;;  %v25_v16 = vld [vmem:[%s424_s3] sm:$0x1]  ;;  %vm165_vm2 = vcmask 64512  }
   0x6   :  { %300 = vmatprep.subr.bf16.mxu0 %v332_v5  ;;  %v259_v17 = vld [vmem:[%s423_s2] ss:$0 sm:$0xff]  ;;  %s334_s3 = smov [#allocation2]   ;;  %vm242_vm3 = vcmask 57344  }
   0x7   :  { %v30_v18 = vld [vmem:[%s426_s5] sm:$0x1]  ;;  %s250_s18 = sshll.u32 %s334_s3, 4  ;;  %s251_s18 = int_to_ptr.vmem [resolvable:$true] %s250_s18 }
   0x8   :  { %287 = vmatpush3.bf16.msra.mxu1 %v113_v12  ;;  %s307_s2 = scalar_lea.vmem %s251_s18, 16  ;;  %s311_s5 = scalar_lea.vmem %s251_s18, 32 }
   0x9   :  { %302 = vmatpush3.bf16.msra.mxu0 %v301_v14  ;;  %p308_p0 = scmp.ne.s32.totalorder %s251_s18, %s307_s2  ;;  %p312_p1 = scmp.lt.s32.totalorder %s251_s18, %s251_s18 }
   0xa   :  { %292 = vmatprep.subr.mxu0 %v331_v3  ;;  %p313_p2 = scmp.lt.s32.totalorder %s311_s5, %s307_s2 }
   0xb   :  { %289 = vmatmul.mubr.msk.bf16.vlgmr.msra.gmra.mrb[0].mxu1 %vm31_vm1, %v107_v15 }
   0xc   :  { %282 = vmatmul.mubr.msk.f32.vlgmr.msra.gmra.mrb[0].mxu0 %vm31_vm1, %v25_v16  ;;  %p314_p3 = por %p313_p2, %p312_p1 }
   0xd   :  { %294 = vmatprep.mubr.msk.f32.mxu0 %vm333_vm0, %v331_v3 }
   0xe   :  { %p315_p4 = pnand %p314_p3, %p308_p0 }
  0xde   :  { %v158_v19 = vpop.f32.mrb[0].mxu1 }
  0xdf   :  { %v159_v20 = vadd.f32 %v259_v17, %v158_v19  ;;  %v290_v21 = vpop.f32.mrb[1].mxu1  ;;  %v101_v22 = vpop.f32.mrb[0].mxu0 }
  0xe0   :  { %v161_v23 = vpop.f32.mrb[2].mxu1  ;;  %v102_v24 = vadd.f32 %v101_v22, %v30_v18  ;;  %v283_v25 = vpop.f32.mrb[1].mxu0 }
  0xe1   :  { %v164_v26 = vmax.f32 %v159_v20, 0.0  ;;  %v291_v27 = vpop.f32.mrb[3].mxu1 }
  0xe2   :  { %v105_v28 = vmax.f32 %v102_v24, 0.0 }
  0xe3   :  { %293 = vmatpush3.xpose.msk.msra.mxu0 %vm165_vm2, %v164_v26 }
  0xe6   :  { %295 = vmatmul.mubr.msk.f32.vlgmr.msra.gmra.mrb[2].mxu0 %vm165_vm2, %v105_v28 }
 0x1b9   :  { %v238_v29 = vpop.f32.mrb[2].mxu0 }
 0x1ba   :  { %243 = vst.msk [vmem:[#allocation2] sm:$0x1] %vm242_vm3, %v238_v29  ;;  %v296_v30 = vpop.f32.mrb[3].mxu0 }
 0x1bb   :  { %318 = shalt.err (!%p315_p4)
}
 0x1bc   :  { %s319_s21 = scalar_lea.hbm %s427_s6, 16 }
 0x1bd   :  { %p320_p5 = scmp.ne.s32.totalorder %s427_s6, %s319_s21  ;;  %p323_p6 = scmp.lt.u32.totalorder %s319_s21, %s427_s6 }
 0x1bf   :  { %p325_p7 = pnand %p323_p6, %p320_p5 }
 0x1c1   :  { %328 = shalt.err (!%p325_p7)
}
 0x1c2   :  { %253 = dma.vmem_to_hbm [thread:$0]  %s251_s18, 16, %s427_s6, [#allocation3]  }
 0x1c3   :  { %329 = dma.done.wait [#allocation3], 16  }
 0x1c4   :  { %330 = vsyncadd [#allocation3], 4294967280 }
 0x1c5   :  { %257 = vsyncpa [#allocation3], 1 }

</bundles_post_ra>
